<compile_context>
chip_gen: v6e
topology: v6e:2x2x1
jax: 0.10.0
libtpu: 0.0.40
codegen_flags: <defaults>
</compile_context>

<pallas_src>
import jax
import jax.numpy as jnp
from jax.experimental import pallas as pl
from jax.experimental.pallas import tpu as pltpu

D_IN = 64
D_OUT = 128


def _attn_kernel(q_ref, k_ref, v_ref, w_ref, b_ref, o_ref):
    # q/k/v: (TB, S, 64); w: (3, 64, 128) = [wq/16, wk, wv]; b: (3, 1, 128)
    tb, s, _ = q_ref.shape

    q = q_ref[...].reshape(tb * s, D_IN)
    k = k_ref[...].reshape(tb * s, D_IN)
    v = v_ref[...].reshape(tb * s, D_IN)

    # Three small projection matmuls (K=64, N=128): 1 MXU pass each on v5e,
    # no padding / zero-MACs anywhere.
    v1 = (jnp.dot(q, w_ref[0], preferred_element_type=jnp.float32)
          + b_ref[0]).reshape(tb, s, D_OUT)          # query proj, already /16
    v2 = (jnp.dot(k, w_ref[1], preferred_element_type=jnp.float32)
          + b_ref[1]).reshape(tb, s, D_OUT)          # key proj
    v3 = (jnp.dot(v, w_ref[2], preferred_element_type=jnp.float32)
          + b_ref[2]).reshape(tb, s, D_OUT)          # value proj

    # Batched scores: contracted last dim -> no explicit XLU transpose.
    scores = jnp.einsum('bqd,bkd->bqk', v1, v2,
                        preferred_element_type=jnp.float32)

    # Numerically stable softmax; 0.1 folded into the (S,1) reciprocal so the
    # full (S,S) prob tile is scaled only once.
    m = jnp.max(scores, axis=-1, keepdims=True)
    e = jnp.exp(scores - m)
    denom = jnp.sum(e, axis=-1, keepdims=True)
    p = e * (0.1 * pl.reciprocal(denom, approx=False))

    o_ref[...] = jnp.einsum('bqk,bkd->bqd', p, v3,
                            preferred_element_type=jnp.float32)
    # TODO(synk): for production S in the hundreds+, switch this block to a
    # flash-style KV-tiled loop with (TB,S,1) m/l accumulators (VMEM O(S) not
    # O(S^2)); at S=8 materializing the full tile is optimal.


def prepare_params(wq, bq, wk, bk, wv, bv):
    """One-time (hoisted) param prep: stack weights and fold the exact 1/16
    score scale (power-of-two -> bit-exact) into the query projection."""
    w = jnp.stack([wq * 0.0625, wk, wv])                        # (3, 64, 128)
    b = jnp.stack([bq * 0.0625, bk, bv]).reshape(3, 1, D_OUT)   # (3, 1, 128)
    return w, b


def _pick_tb(B, S):
    """Largest batch tile that fits the VMEM budget, capped so the grid has
    >=2 steps when B>=2 (keeps both v7x TensorCores busy)."""
    per_batch = (
        3 * S * D_IN * 4 * 2      # q, k, v input blocks, double-buffered
        + S * D_OUT * 4 * 2       # output block, double-buffered
        + 3 * S * D_OUT * 4       # v1 / v2 / v3 intermediates
        + 3 * S * S * 4           # scores / exp / probs (O(S^2) term)
    )
    fixed = 3 * D_IN * D_OUT * 4 + 3 * D_OUT * 4   # weights + bias, single buffer
    budget = 32 * 1024 * 1024 - fixed              # conservative (v7x-safe)
    tb = max(1, min(B, budget // max(1, per_batch)))
    if B >= 2:
        tb = min(tb, B // 2)                       # >=2 grid steps
        tb = max(tb, 1)
    while B % tb:
        tb -= 1
    return tb


def _const_spec(shape):
    """BlockSpec for a grid-invariant operand: fetched once, single buffer."""
    idx = lambda b: (0,) * len(shape)
    try:
        return pl.BlockSpec(shape, idx, pipeline_mode=pl.Buffered(1))
    except (TypeError, AttributeError):
        return pl.BlockSpec(shape, idx)


@jax.jit
def attention_model(Q, K, V, w_stack, b_stack):
    B, S, _ = Q.shape
    assert S % 8 == 0, "S must be a multiple of 8 (f32 sublane) for clean tiling"
    tb = _pick_tb(B, S)
    grid = (B // tb,)

    return pl.pallas_call(
        _attn_kernel,
        out_shape=jax.ShapeDtypeStruct((B, S, D_OUT), jnp.float32),
        grid_spec=pltpu.PrefetchScalarGridSpec(
            num_scalar_prefetch=0,
            grid=grid,
            in_specs=[
                pl.BlockSpec((tb, S, D_IN), lambda b: (b, 0, 0)),   # Q
                pl.BlockSpec((tb, S, D_IN), lambda b: (b, 0, 0)),   # K
                pl.BlockSpec((tb, S, D_IN), lambda b: (b, 0, 0)),   # V
                _const_spec((3, D_IN, D_OUT)),                      # stacked W
                _const_spec((3, 1, D_OUT)),                         # stacked b
            ],
            out_specs=pl.BlockSpec((tb, S, D_OUT), lambda b: (b, 0, 0)),
        ),
        compiler_params=pltpu.CompilerParams(
            dimension_semantics=("parallel",),
            vmem_limit_bytes=48 * 1024 * 1024),
    )(Q, K, V, w_stack, b_stack)


if __name__ == "__main__":
    key = jax.random.PRNGKey(0)
    keys = jax.random.split(key, 9)

    B, S = 2, 8
    Q = jax.random.normal(keys[0], (B, S, D_IN), dtype=jnp.float32)
    K = jax.random.normal(keys[1], (B, S, D_IN), dtype=jnp.float32)
    V = jax.random.normal(keys[2], (B, S, D_IN), dtype=jnp.float32)

    # Deterministic parameter init (PyTorch Linear-style uniform bound)
    bound = 1.0 / (D_IN ** 0.5)
    wq = jax.random.uniform(keys[3], (D_IN, D_OUT), jnp.float32, -bound, bound)
    bq = jax.random.uniform(keys[4], (D_OUT,), jnp.float32, -bound, bound)
    wk = jax.random.uniform(keys[5], (D_IN, D_OUT), jnp.float32, -bound, bound)
    bk = jax.random.uniform(keys[6], (D_OUT,), jnp.float32, -bound, bound)
    wv = jax.random.uniform(keys[7], (D_IN, D_OUT), jnp.float32, -bound, bound)
    bv = jax.random.uniform(keys[8], (D_OUT,), jnp.float32, -bound, bound)

    # Hoisted, one-time weight prep (out of the per-call path).
    w_stack, b_stack = jax.block_until_ready(
        prepare_params(wq, bq, wk, bk, wv, bv))

    out = attention_model(Q, K, V, w_stack, b_stack)
    out = jax.block_until_ready(out)

    # Pure-JAX reference (original unfused/unscaled PyTorch formulation).
    def ref(Q, K, V):
        v1 = Q @ wq + bq
        v2 = K @ wk + bk
        v3 = V @ wv + bv
        s = jnp.einsum("bqd,bkd->bqk", v1, v2) / 16.0
        p = 0.1 * jax.nn.softmax(s, axis=-1)
        return jnp.einsum("bqk,bkd->bqd", p, v3)

    expected = ref(Q, K, V)
    assert out.shape == (B, S, D_OUT)
    assert jnp.allclose(out, expected, atol=1e-5, rtol=1e-5)

    print("KERNEL_OK")
</pallas_src>

<mosaic_0001>
module attributes {stable_mosaic.version = 11 : i64} {
  func.func @_attn_kernel(%arg0: i32, %arg1: memref<1x8x64xf32, #tpu.memory_space<vmem>>, %arg2: memref<1x8x64xf32, #tpu.memory_space<vmem>>, %arg3: memref<1x8x64xf32, #tpu.memory_space<vmem>>, %arg4: memref<3x64x128xf32, #tpu.memory_space<vmem>>, %arg5: memref<3x1x128xf32, #tpu.memory_space<vmem>>, %arg6: memref<1x8x128xf32, #tpu.memory_space<vmem>>) attributes {dimension_semantics = [#tpu.dimension_semantics<parallel>], iteration_bounds = array<i64: 2>, scalar_prefetch = 0 : i64, scratch_operands = 0 : i64, tpu.core_type = #tpu.core_type<tc>, window_params = [{transform_indices = @transform_0, window_bounds = array<i64: 1, 8, 64>}, {transform_indices = @transform_1, window_bounds = array<i64: 1, 8, 64>}, {transform_indices = @transform_2, window_bounds = array<i64: 1, 8, 64>}, {pipeline_mode = #tpu.pipeline_mode<synchronous>, transform_indices = @transform_3, window_bounds = array<i64: 3, 64, 128>}, {pipeline_mode = #tpu.pipeline_mode<synchronous>, transform_indices = @transform_4, window_bounds = array<i64: 3, 1, 128>}, {transform_indices = @transform_5, window_bounds = array<i64: 1, 8, 128>}]} {
    %c0 = arith.constant 0 : index
    %c0_0 = arith.constant 0 : index
    %c0_1 = arith.constant 0 : index
    %0 = vector.load %arg1[%c0, %c0_0, %c0_1] : memref<1x8x64xf32, #tpu.memory_space<vmem>>, vector<1x8x64xf32>
    %1 = vector.shape_cast %0 : vector<1x8x64xf32> to vector<8x64xf32>
    %c0_2 = arith.constant 0 : index
    %c0_3 = arith.constant 0 : index
    %c0_4 = arith.constant 0 : index
    %2 = vector.load %arg2[%c0_2, %c0_3, %c0_4] : memref<1x8x64xf32, #tpu.memory_space<vmem>>, vector<1x8x64xf32>
    %3 = vector.shape_cast %2 : vector<1x8x64xf32> to vector<8x64xf32>
    %c0_5 = arith.constant 0 : index
    %c0_6 = arith.constant 0 : index
    %c0_7 = arith.constant 0 : index
    %4 = vector.load %arg3[%c0_5, %c0_6, %c0_7] : memref<1x8x64xf32, #tpu.memory_space<vmem>>, vector<1x8x64xf32>
    %5 = vector.shape_cast %4 : vector<1x8x64xf32> to vector<8x64xf32>
    %c0_8 = arith.constant 0 : index
    %c0_9 = arith.constant 0 : index
    %c0_10 = arith.constant 0 : index
    %6 = vector.load %arg4[%c0_8, %c0_9, %c0_10] : memref<3x64x128xf32, #tpu.memory_space<vmem>>, vector<1x64x128xf32>
    %7 = vector.shape_cast %6 : vector<1x64x128xf32> to vector<64x128xf32>
    %cst = arith.constant dense<0.000000e+00> : vector<8x128xf32>
    %8 = tpu.matmul %1, %7, %cst {dimension_numbers = #tpu.dot_dimension_numbers<[1], [0], [0], [1], [0, 0, 1, 1], [], []>} : vector<8x64xf32>, vector<64x128xf32>, vector<8x128xf32> -> vector<8x128xf32>
    %c0_11 = arith.constant 0 : index
    %c0_12 = arith.constant 0 : index
    %c0_13 = arith.constant 0 : index
    %9 = vector.load %arg5[%c0_11, %c0_12, %c0_13] : memref<3x1x128xf32, #tpu.memory_space<vmem>>, vector<1x1x128xf32>
    %10 = vector.shape_cast %9 : vector<1x1x128xf32> to vector<1x128xf32>
    %11 = vector.broadcast %10 : vector<1x128xf32> to vector<8x128xf32>
    %12 = arith.addf %8, %11 : vector<8x128xf32>
    %13 = vector.shape_cast %12 : vector<8x128xf32> to vector<1x8x128xf32>
    %c1 = arith.constant 1 : index
    %c0_14 = arith.constant 0 : index
    %c0_15 = arith.constant 0 : index
    %14 = vector.load %arg4[%c1, %c0_14, %c0_15] : memref<3x64x128xf32, #tpu.memory_space<vmem>>, vector<1x64x128xf32>
    %15 = vector.shape_cast %14 : vector<1x64x128xf32> to vector<64x128xf32>
    %cst_16 = arith.constant dense<0.000000e+00> : vector<8x128xf32>
    %16 = tpu.matmul %3, %15, %cst_16 {dimension_numbers = #tpu.dot_dimension_numbers<[1], [0], [0], [1], [0, 0, 1, 1], [], []>} : vector<8x64xf32>, vector<64x128xf32>, vector<8x128xf32> -> vector<8x128xf32>
    %c1_17 = arith.constant 1 : index
    %c0_18 = arith.constant 0 : index
    %c0_19 = arith.constant 0 : index
    %17 = vector.load %arg5[%c1_17, %c0_18, %c0_19] : memref<3x1x128xf32, #tpu.memory_space<vmem>>, vector<1x1x128xf32>
    %18 = vector.shape_cast %17 : vector<1x1x128xf32> to vector<1x128xf32>
    %19 = vector.broadcast %18 : vector<1x128xf32> to vector<8x128xf32>
    %20 = arith.addf %16, %19 : vector<8x128xf32>
    %21 = vector.shape_cast %20 : vector<8x128xf32> to vector<1x8x128xf32>
    %c2 = arith.constant 2 : index
    %c0_20 = arith.constant 0 : index
    %c0_21 = arith.constant 0 : index
    %22 = vector.load %arg4[%c2, %c0_20, %c0_21] : memref<3x64x128xf32, #tpu.memory_space<vmem>>, vector<1x64x128xf32>
    %23 = vector.shape_cast %22 : vector<1x64x128xf32> to vector<64x128xf32>
    %cst_22 = arith.constant dense<0.000000e+00> : vector<8x128xf32>
    %24 = tpu.matmul %5, %23, %cst_22 {dimension_numbers = #tpu.dot_dimension_numbers<[1], [0], [0], [1], [0, 0, 1, 1], [], []>} : vector<8x64xf32>, vector<64x128xf32>, vector<8x128xf32> -> vector<8x128xf32>
    %c2_23 = arith.constant 2 : index
    %c0_24 = arith.constant 0 : index
    %c0_25 = arith.constant 0 : index
    %25 = vector.load %arg5[%c2_23, %c0_24, %c0_25] : memref<3x1x128xf32, #tpu.memory_space<vmem>>, vector<1x1x128xf32>
    %26 = vector.shape_cast %25 : vector<1x1x128xf32> to vector<1x128xf32>
    %27 = vector.broadcast %26 : vector<1x128xf32> to vector<8x128xf32>
    %28 = arith.addf %24, %27 : vector<8x128xf32>
    %29 = vector.shape_cast %28 : vector<8x128xf32> to vector<1x8x128xf32>
    "tpu.trace_start"() <{level = 10 : i32, message = "bqd,bkd->bqk"}> : () -> ()
    %cst_26 = arith.constant dense<0.000000e+00> : vector<1x8x8xf32>
    %30 = tpu.matmul %13, %21, %cst_26 {dimension_numbers = #tpu.dot_dimension_numbers<[2], [2], [1], [1], [0, 0, 0, 1, 1, 1], [0], [0]>} : vector<1x8x128xf32>, vector<1x8x128xf32>, vector<1x8x8xf32> -> vector<1x8x8xf32>
    "tpu.trace_stop"() : () -> ()
    %cst_27 = arith.constant dense<0xFF800000> : vector<1x8xf32>
    %31 = vector.multi_reduction <maximumf>, %30, %cst_27 [2] : vector<1x8x8xf32> to vector<1x8xf32>
    %32 = vector.shape_cast %31 : vector<1x8xf32> to vector<1x8x1xf32>
    %33 = vector.broadcast %32 : vector<1x8x1xf32> to vector<1x8x8xf32>
    %34 = arith.subf %30, %33 : vector<1x8x8xf32>
    %35 = math.exp %34 : vector<1x8x8xf32>
    %cst_28 = arith.constant dense<0.000000e+00> : vector<1x8xf32>
    %36 = vector.multi_reduction <add>, %35, %cst_28 [2] : vector<1x8x8xf32> to vector<1x8xf32>
    %37 = vector.shape_cast %36 : vector<1x8xf32> to vector<1x8x1xf32>
    %38 = tpu.reciprocal %37 : vector<1x8x1xf32> -> vector<1x8x1xf32>
    %cst_29 = arith.constant 1.000000e-01 : f32
    %39 = vector.broadcast %cst_29 : f32 to vector<1x8x1xf32>
    %40 = arith.mulf %39, %38 : vector<1x8x1xf32>
    %41 = vector.broadcast %40 : vector<1x8x1xf32> to vector<1x8x8xf32>
    %42 = arith.mulf %35, %41 : vector<1x8x8xf32>
    "tpu.trace_start"() <{level = 10 : i32, message = "bqk,bkd->bqd"}> : () -> ()
    %cst_30 = arith.constant dense<0.000000e+00> : vector<1x8x128xf32>
    %43 = tpu.matmul %42, %29, %cst_30 {dimension_numbers = #tpu.dot_dimension_numbers<[2], [1], [1], [2], [0, 0, 0, 1, 1, 2], [0], [0]>} : vector<1x8x8xf32>, vector<1x8x128xf32>, vector<1x8x128xf32> -> vector<1x8x128xf32>
    "tpu.trace_stop"() : () -> ()
    %c0_31 = arith.constant 0 : index
    %c0_32 = arith.constant 0 : index
    %c0_33 = arith.constant 0 : index
    %44 = vector.load %arg6[%c0_31, %c0_32, %c0_33] : memref<1x8x128xf32, #tpu.memory_space<vmem>>, vector<1x8x128xf32>
    tpu.vector_store %arg6[%c0_31, %c0_32, %c0_33], %43 {strides = array<i32>} : memref<1x8x128xf32, #tpu.memory_space<vmem>>, vector<1x8x128xf32>,
    return
  }
  func.func @transform_0(%arg0: i32) -> (i32, i32, i32) {
    %c0_i32 = arith.constant 0 : i32
    %c0_i32_0 = arith.constant 0 : i32
    %c0_i32_1 = arith.constant 0 : i32
    return %arg0, %c0_i32, %c0_i32_0 : i32, i32, i32
  }
  func.func @transform_1(%arg0: i32) -> (i32, i32, i32) {
    %c0_i32 = arith.constant 0 : i32
    %c0_i32_0 = arith.constant 0 : i32
    %c0_i32_1 = arith.constant 0 : i32
    return %arg0, %c0_i32, %c0_i32_0 : i32, i32, i32
  }
  func.func @transform_2(%arg0: i32) -> (i32, i32, i32) {
    %c0_i32 = arith.constant 0 : i32
    %c0_i32_0 = arith.constant 0 : i32
    %c0_i32_1 = arith.constant 0 : i32
    return %arg0, %c0_i32, %c0_i32_0 : i32, i32, i32
  }
  func.func @transform_3(%arg0: i32) -> (i32, i32, i32) {
    %c0_i32 = arith.constant 0 : i32
    %c0_i32_0 = arith.constant 0 : i32
    %c0_i32_1 = arith.constant 0 : i32
    %c0_i32_2 = arith.constant 0 : i32
    return %c0_i32, %c0_i32_0, %c0_i32_1 : i32, i32, i32
  }
  func.func @transform_4(%arg0: i32) -> (i32, i32, i32) {
    %c0_i32 = arith.constant 0 : i32
    %c0_i32_0 = arith.constant 0 : i32
    %c0_i32_1 = arith.constant 0 : i32
    %c0_i32_2 = arith.constant 0 : i32
    return %c0_i32, %c0_i32_0, %c0_i32_1 : i32, i32, i32
  }
  func.func @transform_5(%arg0: i32) -> (i32, i32, i32) {
    %c0_i32 = arith.constant 0 : i32
    %c0_i32_0 = arith.constant 0 : i32
    %c0_i32_1 = arith.constant 0 : i32
    return %arg0, %c0_i32, %c0_i32_0 : i32, i32, i32
  }
}

</mosaic_0001>

<bundles_post_ra>
// kernel: attention_model.1
= control target key start
LH: loop header
LB: loop body
LE: loop exit
PB: predicated region body
PF: predicated region fallthrough
CT: control target
= control target key end

     0   :  { %s1630_s0 = inlined_call_operand.hbm [shape: f32[2,8,64], index: 0, kind: input, shape index: {}]   ;;  %s1631_s1 = inlined_call_operand.hbm [shape: f32[2,8,64], index: 1, kind: input, shape index: {}]   ;;  %s1632_s2 = inlined_call_operand.hbm [shape: f32[2,8,64], index: 2, kind: input, shape index: {}]   ;;  %s1633_s3 = inlined_call_operand.hbm [shape: f32[3,64,128], index: 3, kind: input, shape index: {}]   ;;  %s1634_s4 = inlined_call_operand.vmem [shape: f32[3,1,128], index: 4, kind: input, shape index: {}]   ;;  %s1635_s5 = inlined_call_operand.hbm [shape: f32[2,8,128], index: 5, kind: output, shape index: {}]  }
   0x1   :  { %1648 = sst [smem:[#allocation20_spill]] %s1631_s1 }
   0x2   :  { %1649 = sst [smem:[#allocation21_spill]] %s1635_s5 }
   0x3   :  { %10 = vsyncpa [#allocation3], 0 }
   0x4   :  { %12 = vsyncpa [#allocation3 + $0x1], 0 }
   0x5   :  { %13 = vsyncpa [#allocation6], 0 }
   0x6   :  { %15 = vsyncpa [#allocation6 + $0x1], 0 }
   0x7   :  { %16 = vsyncpa [#allocation9], 0 }
   0x8   :  { %17 = vsyncpa [#allocation4], 0 }
   0x9   :  { %19 = vsyncpa [#allocation4 + $0x1], 0  ;;  %s1317_s18 = smov 0   ;;  %s1319_s19 = smov 0  }
   0xa   :  { %s1321_s20 = smov 0   ;;  %s1323_s21 = smov 0  }
   0xb LB: > { %1650 = sst [smem:[#allocation15_spill]] %s1264_s18  ;;  %s1338_s22 = sadd.s32 1, %s1276_s21   ;;  %s1276_s21 = sphi %s1323_s21, %s1676_s21   ;;  %s1272_s20 = sphi %s1321_s20, %s1680_s20   ;;  %s1268_s19 = sphi %s1319_s19, %s1679_s19   ;;  %s1264_s18 = sphi %s1317_s18, %s1678_s18  }
   0xc   : > { %1651 = sst [smem:[#allocation16_spill]] %s1276_s21  ;;  %s32_s23 = sadd.s32 1, %s1272_s20 }
   0xd   : > { %1652 = sst [smem:[#allocation17_spill]] %s1338_s22  ;;  %s29_s24 = ssub.s32 %s1276_s21, %s1338_s22 }
   0xe   : > { %p1636_p0 = scmp.ne.s32.totalorder %s1272_s20, %s1268_s19  ;;  %p30_p1 = scmp.eq.s32.totalorder %s29_s24, 0 }
   0xf   : > { %p40_p2 = scmp.eq.s32.totalorder %s1276_s21, 0  ;;  %p1050_p4 = scmp.lt.s32.totalorder %s1276_s21, 2 }
  0x10   : > { %s1349_s25 = scalar_select %p30_p1, %s1272_s20, %s32_s23  }
  0x11   : > { %p41_p5 = por %p40_p2, %p1636_p0  ;;  %s1637_s26 = sand.u32 1, %s1272_s20  }
  0x12   : > { %1653 = sst [smem:[#allocation18_spill]] %s1349_s25  ;;  %s1357_s27 = sshll.u32 %s1637_s26, 3 }
  0x13   : > { %s1360_s28 = sshll.u32 %s1276_s21, 7  ;;  %p1362_p6 = pnand %p1050_p4, %p41_p5 }
  0x14   : > { %s223_s30 = sand.u32 1, %s1276_s21   ;;  %s1655_s1 = sld [smem:[#allocation20_spill]] }
  0x15   : > { %s227_s9 = scalar_lea.vmem [#allocation5], %s1357_s27  ;;  %s1374_s11 = scalar_lea.sflag [#allocation6], %s223_s30 }
  0x16   : > { %s234_s10 = sshll.u32 %s227_s9, 4  ;;  %p1380_p8 = pneg %p1362_p6  ;;  %s235_s10 = int_to_ptr.vmem [resolvable:$true] %s234_s10 }
  0x1a   : > { %s1371_s8 = scalar_lea.hbm %s1655_s1, %s1360_s28  ;;  %s1099_s16 = scalar_lea.hbm %s1655_s1, 256 }
  0x1b   : > { %s1094_s12 = scalar_lea.hbm %s1371_s8, 128  ;;  %p1100_p11 = scmp.lt.s32.totalorder %s1371_s8, %s1655_s1 }
  0x1c   : > { %p1095_p7 = scmp.ne.s32.totalorder %s1371_s8, %s1094_s12  ;;  %p1101_p12 = scmp.lt.s32.totalorder %s1099_s16, %s1094_s12 }
  0x1e   : > { %p1097_p9 = pnand %p1380_p8, %p1095_p7  ;;  %p1102_p13 = por %p1101_p12, %p1100_p11 }
  0x20   : > { %p1098_p10 = pneg %p1097_p9 }
  0x22   : > { %p1103_p1 = pnand %p1102_p13, %p1098_p10 }
  0x24   : > { %1106 = shalt.err (!%p1103_p1)
}
  0x25   : > { %s1107_s24 = scalar_lea.vmem %s235_s10, 128  ;;  %s1278_s30 = smov [#allocation5]  }
  0x26   : > { %p1108_p2 = scmp.ne.s32.totalorder %s235_s10, %s1107_s24  ;;  %s1112_s6 = sshll.u32 %s1278_s30, 4  ;;  %s1113_s6 = int_to_ptr.vmem [resolvable:$false] %s1112_s6 }
  0x27   : > { %s1114_s7 = scalar_lea.vmem %s1113_s6, 256  ;;  %p1115_p7 = scmp.lt.s32.totalorder %s235_s10, %s1113_s6 }
  0x28   : > { %p1110_p4 = pnand %p1108_p2, %p1380_p8  ;;  %p1116_p9 = scmp.lt.s32.totalorder %s1114_s7, %s1107_s24 }
  0x2a   : > { %p1111_p5 = pneg %p1110_p4  ;;  %p1117_p3 = por %p1116_p9, %p1115_p7 }
  0x2c   : > { %p1118_p0 = pnand %p1117_p3, %p1111_p5 }
  0x2e   : > { %1121 = shalt.err (!%p1118_p0)
}
  0x2f   : > { %1041 = dma.hbm_to_vmem [thread:$0]  (!%p1362_p6), %s1371_s8, 128, %s235_s10, %s1374_s11  }
  0x30   : > { %s1400_s9 = sadd.s32 4294967295, %s1276_s21   ;;  %s892_s12 = sadd.s32 4294967294, %s1276_s21  }
  0x31   : > { %p45_p0 = scmp.ne.s32.totalorder %s1268_s19, %s1264_s18  ;;  %p1638_p3 = scmp.eq.s32.totalorder %s1400_s9, 0 }
  0x32   : > { %p163_p10 = scmp.eq.s32.totalorder %s1400_s9, 1  ;;  %p169_p11 = scmp.eq.s32.totalorder %s892_s12, 1 }
  0x33   : > { %p1409_p12 = por %p1638_p3, %p45_p0  ;;  %p893_p13 = scmp.ge.s32.totalorder %s1276_s21, 1 }
  0x34   : > { %p1658_p1 = scmp.ne.s32.totalorder %s1272_s20, %s1268_s19  ;;  %p1421_p4 = por %p169_p11, %p45_p0 }
  0x35   : > { %s1657_s14 = scalar_select %p1409_p12, 1, 0 }
  0x36   : > { %p1417_p2 = por %p163_p10, %p1658_p1  ;;  %p176_p5 = scmp.lt.s32.totalorder %s1276_s21, 3 }
  0x37   : > { %s1660_s10 = scalar_select %p1421_p4, 1, 0 }
  0x38   : > { %s1659_s8 = scalar_select %p1417_p2, 1, 0 }
  0x39   : > { %1661 = sst [smem:[#allocation19_spill]] %s1660_s10  ;;  %p1426_p7 = pnand %p893_p13, %p176_p5 }
  0x3a   : > { %s1279_s16 = smov [#allocation8]   ;;  %s1436_s30 = scalar_lea.hbm %s1630_s0, %s1360_s28 }
  0x3b   : > { %s1662_s15 = scalar_select %p1426_p7, 1, 0 }
  0x3c   : > { %s188_s17 = sshll.u32 %s1279_s16, 4  ;;  %p1031_p9 = pneg %p1426_p7  ;;  %s189_s17 = int_to_ptr.vmem [resolvable:$true] %s188_s17 }
  0x3d   : > { %s209_s7 = scalar_lea.vmem [#allocation2], %s1357_s27  ;;  %s1451_s1 = scalar_lea.hbm %s1632_s2, %s1360_s28 }
  0x3e   : > { %p1440_p0 = pnand %p1031_p9, %p1638_p3  ;;  %s216_s12 = sshll.u32 %s209_s7, 4  ;;  %s1445_s12 = int_to_ptr.vmem [resolvable:$true] %s216_s12 }
  0x3f   : > { %s1133_s23 = scalar_lea.vmem %s189_s17, 3072  ;;  %p1141_p5 = scmp.lt.s32.totalorder %s189_s17, %s189_s17 }
  0x40   : > { %p1124_p10 = pneg %p1440_p0  ;;  %p1134_p11 = scmp.ne.s32.totalorder %s189_s17, %s1133_s23 }
  0x41   : > { %p1142_p9 = scmp.lt.s32.totalorder %s1133_s23, %s1133_s23 }
  0x42   : > { %p1136_p13 = pnand %p1134_p11, %p1124_p10 }
  0x43   : > { %p1143_p3 = por %p1142_p9, %p1141_p5 }
  0x44   : > { %p1137_p1 = pneg %p1136_p13 }
  0x46   : > { %p1144_p4 = pnand %p1143_p3, %p1137_p1 }
  0x48   : > { %1147 = shalt.err (!%p1144_p4)
}
  0x49   : > { %s1280_s24 = smov 128   ;;  %s1281_s26 = smov 8  }
  0x4a   : > { %1034 = dma.hbm_to_vmem [thread:$0]  (!%p1440_p0), %s1633_s3, 3072, %s189_s17, [#allocation9], %s1280_s24, %s1280_s24, %s1281_s26  }
  0x4b   : > { %s1664_s16 = sand.u32 1, %s1272_s20   ;;  %s1148_s22 = scalar_lea.hbm %s1436_s30, 128 }
  0x4c   : > { %s206_s25 = scalar_lea.sflag [#allocation3], %s1664_s16  ;;  %p1149_p10 = scmp.ne.s32.totalorder %s1436_s30, %s1148_s22 }
  0x4d   : > { %s1153_s10 = scalar_lea.hbm %s1630_s0, 256  ;;  %p1154_p11 = scmp.lt.s32.totalorder %s1436_s30, %s1630_s0 }
  0x4e   : > { %p1151_p3 = pnand %p1149_p10, %p1380_p8  ;;  %p1155_p13 = scmp.lt.s32.totalorder %s1153_s10, %s1148_s22 }
  0x50   : > { %p1152_p4 = pneg %p1151_p3  ;;  %p1156_p1 = por %p1155_p13, %p1154_p11 }
  0x52   : > { %p1157_p5 = pnand %p1156_p1, %p1152_p4 }
  0x54   : > { %1160 = shalt.err (!%p1157_p5)
}
  0x55   : > { %s1161_s17 = scalar_lea.vmem %s1445_s12, 128  ;;  %s1282_s6 = smov [#allocation2]  }
  0x56   : > { %p1162_p0 = scmp.ne.s32.totalorder %s1445_s12, %s1161_s17  ;;  %s1166_s21 = sshll.u32 %s1282_s6, 4  ;;  %s1167_s21 = int_to_ptr.vmem [resolvable:$false] %s1166_s21 }
  0x57   : > { %s1168_s24 = scalar_lea.vmem %s1167_s21, 256  ;;  %p1169_p3 = scmp.lt.s32.totalorder %s1445_s12, %s1167_s21 }
  0x58   : > { %p1164_p9 = pnand %p1162_p0, %p1380_p8  ;;  %p1170_p2 = scmp.lt.s32.totalorder %s1168_s24, %s1161_s17 }
  0x5a   : > { %p1165_p10 = pneg %p1164_p9  ;;  %p1171_p12 = por %p1170_p2, %p1169_p3 }
  0x5c   : > { %p1172_p7 = pnand %p1171_p12, %p1165_p10 }
  0x5e   : > { %1175 = shalt.err (!%p1172_p7)
}
  0x5f   : > { %1038 = dma.hbm_to_vmem [thread:$0]  (!%p1362_p6), %s1436_s30, 128, %s1445_s12, %s206_s25  }
  0x60   : > { %s245_s5 = scalar_lea.vmem [#allocation7], %s1357_s27  ;;  %s1176_s22 = scalar_lea.hbm %s1451_s1, 128 }
  0x61   : > { %s252_s18 = sshll.u32 %s245_s5, 4  ;;  %p1177_p4 = scmp.ne.s32.totalorder %s1451_s1, %s1176_s22  ;;  %s253_s18 = int_to_ptr.vmem [resolvable:$true] %s252_s18 }
  0x62   : > { %s1181_s28 = scalar_lea.hbm %s1632_s2, 256  ;;  %p1182_p12 = scmp.lt.s32.totalorder %s1451_s1, %s1632_s2 }
  0x63   : > { %p1179_p11 = pnand %p1177_p4, %p1380_p8  ;;  %p1183_p7 = scmp.lt.s32.totalorder %s1181_s28, %s1176_s22 }
  0x65   : > { %p1180_p2 = pneg %p1179_p11  ;;  %p1184_p13 = por %p1183_p7, %p1182_p12 }
  0x67   : > { %p1185_p1 = pnand %p1184_p13, %p1180_p2 }
  0x69   : > { %1188 = shalt.err (!%p1185_p1)
}
  0x6a   : > { %s1189_s25 = scalar_lea.vmem %s253_s18, 128  ;;  %s1283_s27 = smov [#allocation7]  }
  0x6b   : > { %p1190_p5 = scmp.ne.s32.totalorder %s253_s18, %s1189_s25  ;;  %s1194_s30 = sshll.u32 %s1283_s27, 4  ;;  %s1195_s30 = int_to_ptr.vmem [resolvable:$false] %s1194_s30 }
  0x6c   : > { %s1196_s12 = scalar_lea.vmem %s1195_s30, 256  ;;  %p1197_p10 = scmp.lt.s32.totalorder %s253_s18, %s1195_s30 }
  0x6d   : > { %p1192_p0 = pnand %p1190_p5, %p1380_p8  ;;  %p1198_p3 = scmp.lt.s32.totalorder %s1196_s12, %s1189_s25 }
  0x6f   : > { %p1193_p9 = pneg %p1192_p0  ;;  %p1199_p4 = por %p1198_p3, %p1197_p10 }
  0x71   : > { %p1200_p11 = pnand %p1199_p4, %p1193_p9 }
  0x73   : > { %1203 = shalt.err (!%p1200_p11)
}
  0x74   : > { %1044 = dma.hbm_to_vmem [thread:$0]  (!%p1362_p6), %s1451_s1, 128, %s253_s18, %s1374_s11  }
  0x75   : > { %p1665_p2 = scmp.ne.s32.totalorder %s1662_s15, 0 }
  0x76   : > { %s1503_s13 = sand.u32 (!%p1665_p2), 1, %s1268_s19   ;;  %p1666_p8 = scmp.ne.s32.totalorder (!%p1665_p2), %s1657_s14, 0 }
  0x77   : > { %261 = sbr.rel (%p1665_p2) target bundleno = 1061 (0x425), region = 40  ;;  %s1506_s23 = sshll.u32 (!%p1665_p2), %s1503_s13, 3 }
  0x78   : > { %s264_s17 = scalar_lea.sflag (!%p1665_p2), [#allocation3], %s1503_s13  ;;  %s267_s6 = scalar_lea.vmem (!%p1665_p2), [#allocation2], %s1506_s23 }
  0x7c   : > { %1247 = dma.done.wait (%p1666_p8), %s264_s17, 128  }
  0x7d   : > { %1249 = vsyncadd (%p1666_p8), %s264_s17, 4294967168  ;;  %s272_s1 = sand.u32 1, %s1400_s9   ;;  %s276_s11 = scalar_lea.vmem [#allocation5], %s1506_s23 }
  0x7e   : > { %s273_s29 = scalar_lea.sflag [#allocation6], %s272_s1 }
  0x7f   : > { %1251 = dma.done.wait (%p1666_p8), %s273_s29, 256  }
  0x80   : > { %1253 = vsyncadd (%p1666_p8), %s273_s29, 4294967040  ;;  %s285_s15 = scalar_lea.vmem [#allocation7], %s1506_s23  ;;  %p1667_p6 = scmp.eq.s32.totalorder %s1400_s9, 0 }
  0x82   : > { %1255 = dma.done.wait (%p1667_p6), [#allocation9], 3072   ;;  %p1668_p12 = pmov %p1667_p6 }
  0x83   : > { %v1284_v0 = vmov 0.0   ;;  %vm1285_vm0 = vmmov 0   ;;  %v426_v1 = vld [vmem:[#allocation8 + $0x78] sm:$0xff]  ;;  %v425_v3 = vld [vmem:[#allocation8 + $0x70] sm:$0xff]  ;;  %v424_v5 = vld [vmem:[#allocation8 + $0x68] sm:$0xff]  ;;  %vm344_vm1 = vcmask 523264  }
  0x84   : > { %1257 = vsyncadd (%p1668_p12), [#allocation9], 4294964224  ;;  %971 = vmatprep.subr.mxu1 %v1284_v0  ;;  %952 = vmatprep.subr.mxu0 %v1284_v0  ;;  %v336_v2 = vld [vmem:[#allocation8 + $0x38] sm:$0xff]  ;;  %v335_v4 = vld [vmem:[#allocation8 + $0x30] sm:$0xff]  ;;  %vm668_vm2 = vcmask 64512   ;;  %s325_s10 = scalar_lea.vmem [#allocation10], %s1506_s23 }
  0x85   : > { %987 = vmatprep.mubr.msk.f32.mxu1 %vm1285_vm0, %v1284_v0  ;;  %968 = vmatprep.mubr.msk.f32.mxu0 %vm1285_vm0, %v1284_v0  ;;  %v334_v6 = vld [vmem:[#allocation8 + $0x28] sm:$0xff]  ;;  %v423_v7 = vld [vmem:[#allocation8 + $0x60] sm:$0xff]  ;;  %v422_v9 = vld [vmem:[#allocation8 + $0x58] sm:$0xff]  ;;  %s769_s26 = sshll.u32 %s325_s10, 4  ;;  %s918_s28 = sshll.u32 %s1400_s9, 7  ;;  %s1584_s26 = int_to_ptr.vmem [resolvable:$true] %s769_s26 }
  0x86   : > { %972 = vmatpush3.msra.mxu1 %v426_v1  ;;  %953 = vmatpush3.msra.mxu0 %v336_v2  ;;  %v333_v8 = vld [vmem:[#allocation8 + $0x20] sm:$0xff]  ;;  %v332_v10 = vld [vmem:[#allocation8 + $0x18] sm:$0xff]  ;;  %v421_v11 = vld [vmem:[#allocation8 + $0x50] sm:$0xff]  ;;  %s1669_s25 = sld [smem:[#allocation21_spill]]  ;;  %s756_s30 = scalar_lea.sflag [#allocation4], %s1503_s13 }
  0x87   : > { %973 = vmatprep.subr.mxu1 %v1284_v0  ;;  %954 = vmatprep.subr.mxu0 %v1284_v0  ;;  %v331_v12 = vld [vmem:[#allocation8 + $0x10] sm:$0xff]  ;;  %v420_v13 = vld [vmem:[#allocation8 + $0x48] sm:$0xff]  ;;  %v419_v15 = vld [vmem:[#allocation8 + $0x40] sm:$0xff]  ;;  %s1204_s12 = scalar_lea.vmem %s1584_s26, 128  ;;  %p1670_p13 = scmp.ne.s32.totalorder %s1659_s8, 0 }
  0x88   : > { %974 = vmatpush3.msra.mxu1 %v425_v3  ;;  %955 = vmatpush3.msra.mxu0 %v335_v4  ;;  %v330_v14 = vld [vmem:[#allocation8 + $0x8] sm:$0xff]  ;;  %v329_v16 = vld [vmem:[#allocation8] sm:$0xff]  ;;  %v326_v18 = vld [vmem:[%s267_s6] sm:$0xff]  ;;  %p1205_p7 = scmp.ne.s32.totalorder %s1584_s26, %s1204_s12  ;;  %s1286_s9 = smov [#allocation10]  }
  0x89   : > { %975 = vmatprep.subr.mxu1 %v1284_v0  ;;  %956 = vmatprep.subr.mxu0 %v1284_v0  ;;  %v327_v17 = vld [vmem:[%s276_s11] sm:$0xff]  ;;  %v911_v19 = vld [vmem:[%s1634_s4 + $0x1] ss:$0 sm:$0xff]  ;;  %v908_v20 = vld [vmem:[%s1634_s4] ss:$0 sm:$0xff]  ;;  %s1208_s23 = sshll.u32 %s1286_s9, 4  ;;  %s1209_s23 = int_to_ptr.vmem [resolvable:$false] %s1208_s23 }
  0x8a   : > { %976 = vmatpush3.msra.mxu1 %v424_v5  ;;  %957 = vmatpush3.msra.mxu0 %v334_v6  ;;  %v516_v27 = vld [vmem:[#allocation8 + $0xb8] sm:$0xff]  ;;  %v515_v28 = vld [vmem:[#allocation8 + $0xb0] sm:$0xff]  ;;  %v514_v29 = vld [vmem:[#allocation8 + $0xa8] sm:$0xff]  ;;  %p1206_p1 = pnand %p1205_p7, %p1670_p13  ;;  %s1210_s17 = scalar_lea.vmem %s1209_s23, 256 }
  0x8b   : > { %977 = vmatprep.subr.mxu1 %v1284_v0  ;;  %958 = vmatprep.subr.mxu0 %v1284_v0  ;;  %v513_v30 = vld [vmem:[#allocation8 + $0xa0] sm:$0xff]  ;;  %v512_v31 = vld [vmem:[#allocation8 + $0x98] sm:$0xff]  ;;  %v511_v32 = vld [vmem:[#allocation8 + $0x90] sm:$0xff]  ;;  %p1211_p0 = scmp.lt.s32.totalorder %s1584_s26, %s1209_s23  ;;  %p1212_p9 = scmp.lt.s32.totalorder %s1210_s17, %s1204_s12 }
  0x8c   : > { %978 = vmatpush3.msra.mxu1 %v423_v7  ;;  %959 = vmatpush3.msra.mxu0 %v333_v8  ;;  %v510_v33 = vld [vmem:[#allocation8 + $0x88] sm:$0xff]  ;;  %v509_v34 = vld [vmem:[#allocation8 + $0x80] sm:$0xff]  ;;  %v328_v35 = vld [vmem:[%s285_s15] sm:$0xff]  ;;  %s1589_s27 = scalar_lea.hbm %s1669_s25, %s918_s28  ;;  %p1207_p5 = pneg %p1206_p1 }
  0x8d   : > { %979 = vmatprep.subr.mxu1 %v1284_v0  ;;  %960 = vmatprep.subr.mxu0 %v1284_v0  ;;  %v914_v45 = vld [vmem:[%s1634_s4 + $0x2] ss:$0 sm:$0xff]  ;;  %p1213_p10 = por %p1212_p9, %p1211_p0 }
  0x8e   : > { %980 = vmatpush3.msra.mxu1 %v422_v9  ;;  %961 = vmatpush3.msra.mxu0 %v332_v10 }
  0x8f   : > { %981 = vmatprep.subr.mxu1 %v1284_v0  ;;  %962 = vmatprep.subr.mxu0 %v1284_v0  ;;  %p1214_p3 = pnand %p1213_p10, %p1207_p5 }
  0x90   : > { %982 = vmatpush3.msra.mxu1 %v421_v11  ;;  %963 = vmatpush3.msra.mxu0 %v331_v12 }
  0x91   : > { %983 = vmatprep.subr.mxu1 %v1284_v0  ;;  %964 = vmatprep.subr.mxu0 %v1284_v0 }
  0x92   : > { %984 = vmatpush3.msra.mxu1 %v420_v13  ;;  %965 = vmatpush3.msra.mxu0 %v330_v14 }
  0x93   : > { %985 = vmatprep.subr.mxu1 %v1284_v0  ;;  %966 = vmatprep.subr.mxu0 %v1284_v0 }
  0x94   : > { %986 = vmatpush3.msra.mxu1 %v419_v15  ;;  %967 = vmatpush3.msra.mxu0 %v329_v16 }
  0x95   : > { %988 = vmatmul.mubr.msk.f32.vlgmr.msra.gmra.mxu1 %vm344_vm1, %v327_v17  ;;  %969 = vmatmul.mubr.msk.f32.vlgmr.msra.gmra.mxu0 %vm344_vm1, %v326_v18 }
  0x96   : > { %1009 = vmatprep.subr.mxu1 %v1284_v0  ;;  %1011 = vmatprep.mubr.msk.f32.mxu1 %vm1285_vm0, %v1284_v0 }
  0x97   : > { %990 = vmatprep.subr.mxu0 %v1284_v0  ;;  %1006 = vmatprep.mubr.msk.f32.mxu0 %vm1285_vm0, %v1284_v0 }
  0x98   : > { %991 = vmatpush3.msra.mxu0 %v516_v27 }
  0x99   : > { %992 = vmatprep.subr.mxu0 %v1284_v0 }
  0x9a   : > { %993 = vmatpush3.msra.mxu0 %v515_v28 }
  0x9b   : > { %994 = vmatprep.subr.mxu0 %v1284_v0 }
  0x9c   : > { %995 = vmatpush3.msra.mxu0 %v514_v29 }
  0x9d   : > { %996 = vmatprep.subr.mxu0 %v1284_v0 }
  0x9e   : > { %997 = vmatpush3.msra.mxu0 %v513_v30 }
  0x9f   : > { %998 = vmatprep.subr.mxu0 %v1284_v0 }
  0xa0   : > { %999 = vmatpush3.msra.mxu0 %v512_v31 }
  0xa1   : > { %1000 = vmatprep.subr.mxu0 %v1284_v0 }
  0xa2   : > { %1001 = vmatpush3.msra.mxu0 %v511_v32 }
  0xa3   : > { %1002 = vmatprep.subr.mxu0 %v1284_v0 }
  0xa4   : > { %1003 = vmatpush3.msra.mxu0 %v510_v33 }
  0xa5   : > { %1004 = vmatprep.subr.mxu0 %v1284_v0 }
  0xa6   : > { %1005 = vmatpush3.msra.mxu0 %v509_v34 }
  0xa7   : > { %1007 = vmatmul.mubr.msk.f32.vlgmr.msra.gmra.mxu0 %vm344_vm1, %v328_v35 }
 0x155   : > { %v504_v21 = vpop.f32.mrf.mxu1  ;;  %v414_v22 = vpop.f32.mrf.mxu0 }
 0x156   : > { %v505_v23 = vadd.f32 %v911_v19, %v504_v21  ;;  %v415_v24 = vadd.f32 %v908_v20, %v414_v22 }
 0x157   : > { %v989_v25 = vpop.f32.mrf.mxu1  ;;  %v970_v26 = vpop.f32.mrf.mxu0 }
 0x158   : > { %1010 = vmatpush3.xpose.msra.mxu1 %v505_v23 }
 0x159   : > { %1014 = vmatprep.subr.mxu1 %v1284_v0 }
 0x15b   : > { %1012 = vmatmul.mubr.f32.vlgmr.msra.gmra.mxu1 %v415_v24 }
 0x15c   : > { %1016 = vmatprep.mubr.msk.f32.mxu1 %vm1285_vm0, %v1284_v0 }
 0x167   : > { %v594_v44 = vpop.f32.mrf.mxu0 }
 0x168   : > { %v595_v47 = vadd.f32 %v914_v45, %v594_v44 }
 0x169   : > { %v1008_v46 = vpop.f32.mrf.mxu0 }
 0x16a   : > { %1015 = vmatpush3.msra.mxu1 %v595_v47 }
 0x21b   : > { %v664_v36 = vpop.f32.mrf.mxu1 }
 0x21c   : > { %v669_v37 = vsel %vm668_vm2, %v664_v36, -inf }
 0x21d   : > { %670 = vmax.xlane.f32.xlu0 %v669_v37  ;;  %v1013_v38 = vpop.f32.mrf.mxu1 }
 0x2a6   : > { %v671_v39 = vpop.xlane.xlu0 %670 }
 0x2a7   : > { %v672_v40 = vsub.f32 %v664_v36, %v671_v39 }
 0x2a9   : > { %v673_v41 = vmul.f32 1.442695, %v672_v40 }
 0x2ab   : > { %1090 = vpow2.f32 %v673_v41 }
 0x2b8   : > { %v1091_v42 = vpop.eup %1090 }
 0x2b9   : > { %v675_v43 = vsel %vm668_vm2, %v1091_v42, 0.0 }
 0x2ba   : > { %676 = vadd.xlane.f32.xlu0 %v675_v43 }
 0x343   : > { %v677_v48 = vpop.xlane.xlu0 %676 }
 0x344   : > { %1092 = vrcp.f32 %v677_v48 }
 0x351   : > { %v1093_v49 = vpop.eup %1092 }
 0x352   : > { %v679_v50 = vmul.f32 0.1, %v1093_v49 }
 0x354   : > { %v680_v51 = vmul.f32 %v1091_v42, %v679_v50 }
 0x356   : > { %1017 = vmatmul.mubr.msk.f32.vlgmr.msra.gmra.mxu1 %vm668_vm2, %v680_v51 }
 0x416   : > { %v750_v52 = vpop.f32.mrf.mxu1 }
 0x417   : > { %754 = vst [vmem:[%s325_s10] sm:$0xff] %v750_v52 }
 0x418   : > { %v1018_v53 = vpop.f32.mrf.mxu1 }
 0x419   : > { %1217 = shalt.err (!%p1214_p3)
}
 0x41a   : > { %s1218_s6 = scalar_lea.hbm %s1589_s27, 128  ;;  %s1222_s29 = scalar_lea.hbm %s1669_s25, 256 }
 0x41b   : > { %p1219_p4 = scmp.ne.s32.totalorder %s1589_s27, %s1218_s6  ;;  %p1223_p8 = scmp.lt.s32.totalorder %s1589_s27, %s1669_s25 }
 0x41c   : > { %p1224_p6 = scmp.lt.s32.totalorder %s1222_s29, %s1218_s6 }
 0x41d   : > { %p1220_p11 = pnand %p1219_p4, %p1670_p13 }
 0x41e   : > { %p1225_p12 = por %p1224_p6, %p1223_p8 }
 0x41f   : > { %p1221_p2 = pneg %p1220_p11 }
 0x421   : > { %p1226_p7 = pnand %p1225_p12, %p1221_p2 }
 0x423   : > { %1229 = shalt.err (!%p1226_p7)
}
 0x424   : > { %1029 = dma.vmem_to_hbm [thread:$0]  (%p1670_p13), %s1584_s26, 128, %s1589_s27, %s756_s30  }
 0x425 PF: > { %s1671_s14 = sld [smem:[#allocation15_spill]] }
 0x426   : > { %s1672_s21 = sld [smem:[#allocation19_spill]] }
 0x427   : > { %s1673_s24 = sld [smem:[#allocation16_spill]] }
 0x42b   : > { %s781_s5 = sand.u32 1, %s1671_s14  }
 0x42c   : > { %p1674_p1 = scmp.ne.s32.totalorder %s1672_s21, 0  ;;  %s782_s18 = scalar_lea.sflag [#allocation4], %s781_s5 }
 0x42d   : > { %p1675_p5 = scmp.ge.s32.totalorder %s1673_s24, 2 }
 0x42f   : > { %p1046_p0 = pnand %p1675_p5, %p1674_p1 }
 0x431   : > { %p1047_p9 = pneg %p1046_p0 }
 0x433   : > { %1259 = dma.done.wait (%p1047_p9), %s782_s18, 128  }
 0x434   : > { %1261 = vsyncadd (%p1047_p9), %s782_s18, 4294967168  ;;  %s1676_s21 = sld [smem:[#allocation17_spill]]  ;;  %s1678_s18 = smov %s1268_s19 }
 0x435   : > { %s1677_s22 = sld [smem:[#allocation18_spill]]  ;;  %s1679_s19 = smov %s1272_s20 }
 0x43a   : > { %p22_p10 = scmp.ge.s32.totalorder %s1676_s21, 4  }
 0x43b   : > { %s1680_s20 = smov %s1677_s22 }
 0x43c   :  { %24 = sbr.rel (!%p22_p10) target bundleno = 11 (0xb), region = 117 }
 0x441   :  { %787 = vsyncpa [#allocation3], 1 }
 0x442   :  { %789 = vsyncpa [#allocation3 + $0x1], 1 }
 0x443   :  { %790 = vsyncpa [#allocation6], 1 }
 0x444   :  { %792 = vsyncpa [#allocation6 + $0x1], 1 }
 0x445   :  { %793 = vsyncpa [#allocation9], 1 }
 0x446   :  { %794 = vsyncpa [#allocation4], 1 }
 0x447   :  { %796 = vsyncpa [#allocation4 + $0x1], 1 }

</bundles_post_ra>
